<compile_context>
chip_gen: v5e
topology: v5e:2x2
jax: 0.10.0
libtpu: 0.0.40
codegen_flags: <defaults>
</compile_context>

<pallas_src>
import functools

import jax
import jax.numpy as jnp
from jax.experimental import pallas as pl
from jax.experimental.pallas import tpu as pltpu


def _round_up(n, m):
    return ((n + m - 1) // m) * m


# --------------------------------------------------------------------------
# Kernel
# --------------------------------------------------------------------------
def _encoder_kernel(n_hidden, *refs):
    """Fused MLP VAE-encoder forward for one batch tile.

    refs = [x, W_inp, b_inp, (W_hid_stack, b_hid_stack if n_hidden>0),
            W_out_fused, b_out_fused, out]
    """
    idx = 0
    x_ref = refs[idx]; idx += 1
    w_inp = refs[idx]; b_inp = refs[idx + 1]; idx += 2
    if n_hidden > 0:
        w_hid = refs[idx]; b_hid = refs[idx + 1]; idx += 2
    w_out = refs[idx]; b_out = refs[idx + 1]; idx += 2
    out_ref = refs[idx]

    # Input layer: relu(x @ W + b), f32 accumulation on the MXU.
    h = jnp.dot(x_ref[...].astype(w_inp.dtype), w_inp[...],
                preferred_element_type=jnp.float32)
    h = jnp.maximum(h + b_inp[...], 0.0)

    # Hidden layers (statically unrolled; weights stacked in one 3-D ref).
    for i in range(n_hidden):
        h = jnp.dot(h.astype(w_hid.dtype), w_hid[i],
                    preferred_element_type=jnp.float32)
        h = jnp.maximum(h + b_hid[i], 0.0)

    # Fused output heads: single (H, 2*Z) matmul, one lane-dense store.
    out = jnp.dot(h.astype(w_out.dtype), w_out[...],
                  preferred_element_type=jnp.float32) + b_out[...]
    out_ref[...] = out.astype(out_ref.dtype)


# --------------------------------------------------------------------------
# One-time parameter preparation (host-side; do NOT do this per forward call)
# --------------------------------------------------------------------------
def prepare_params(params, *, weight_dtype=None):
    """Pad / stack / fuse weights once.

    params = {
      'inp':    (W (in, h), b (1, h)),
      'hidden': [(W (h, h), b (1, h)), ...],   # equal widths (as in the module)
      'out1':   (W (h, z), b (1, z)),
      'out2':   (W (h, z), b (1, z)),
    }
    weight_dtype: e.g. jnp.bfloat16 for the MXU-native path (biases stay f32).
    """
    LANE = 128
    n_hidden = len(params["hidden"])
    w_inp, b_inp = params["inp"]
    w_o1, b_o1 = params["out1"]
    w_o2, b_o2 = params["out2"]

    D = w_inp.shape[0]
    H = w_inp.shape[1]
    Z = w_o1.shape[1]
    H_pad = _round_up(H, LANE)
    Z2 = 2 * Z
    Z2_pad = _round_up(Z2, LANE)

    def cast_w(w):
        return w.astype(weight_dtype) if weight_dtype is not None else w

    def pad2(a, rows, cols):
        return jnp.pad(a, ((0, rows - a.shape[0]), (0, cols - a.shape[1])))

    # Input layer: keep D rows unpadded (x streams with its true last dim);
    # pad only the output columns so every downstream tile is lane-dense.
    w_inp_p = pad2(cast_w(w_inp), D, H_pad)
    b_inp_p = pad2(b_inp.astype(jnp.float32), 1, H_pad)

    flat = [w_inp_p, b_inp_p]
    if n_hidden > 0:
        w_hid_p = jnp.stack([pad2(cast_w(w), H_pad, H_pad)
                             for w, _ in params["hidden"]])
        b_hid_p = jnp.stack([pad2(b.astype(jnp.float32), 1, H_pad)
                             for _, b in params["hidden"]])
        flat += [w_hid_p, b_hid_p]

    # Fused output heads: [W_o1 | W_o2] -> (H_pad, Z2_pad), same for bias.
    w_out_p = pad2(cast_w(jnp.concatenate([w_o1, w_o2], axis=1)), H_pad, Z2_pad)
    b_out_p = pad2(jnp.concatenate([b_o1, b_o2], axis=1).astype(jnp.float32),
                   1, Z2_pad)
    flat += [w_out_p, b_out_p]

    return {
        "flat": flat,
        "n_hidden": n_hidden,
        "D": D, "H_pad": H_pad, "Z": Z, "Z2_pad": Z2_pad,
    }


# --------------------------------------------------------------------------
# Batch-tile selection & VMEM estimate
# --------------------------------------------------------------------------
def _choose_batch_tile(B, batch_tile):
    TB = min(batch_tile, _round_up(B, 8))
    TB = max(8, (TB // 8) * 8)
    # Shrink while batch over-padding waste exceeds ~12.5% of the padded batch.
    while TB > 8:
        B_pad = _round_up(B, TB)
        if (B_pad - B) * 8 <= B_pad:
            break
        TB = max(8, ((TB // 2 + 7) // 8) * 8)
    # Ensure >= 2 grid steps so both v7x TensorCores get work (no-op on v5e/v6e).
    if _round_up(B, TB) // TB < 2 and B > 8:
        TB = max(8, _round_up((B + 1) // 2, 8))
    return TB


def _vmem_limit_bytes(prep, TB, x_itemsize):
    w_bytes = sum(int(a.size) * a.dtype.itemsize for a in prep["flat"])
    # Resident weights (x2: default double-buffering of constant blocks),
    # double-buffered streamed x / out tiles, plus f32 intermediates.
    stream = 2 * TB * (prep["D"] + prep["Z2_pad"]) * x_itemsize
    inter = TB * (2 * prep["H_pad"] + prep["Z2_pad"]) * 4
    need = 2 * w_bytes + stream + inter
    # Generous headroom for compiler scratch, capped safely under v7x's 64 MiB/TC.
    return min(max(2 * need + (4 << 20), 32 << 20), 56 << 20)


# --------------------------------------------------------------------------
# Forward wrapper (only x is touched per call)
# --------------------------------------------------------------------------
def variational_encoder_fc(x, prep, *, batch_tile=256):
    """Pallas forward of VariationalEncoderFC.  Returns (mu, logvar), each (B, Z).

    `prep` is the output of prepare_params(); use batch_tile=128 on v5e
    (128-wide MXU) and up to 512 on v6e for very large batches.
    """
    n_hidden = prep["n_hidden"]
    D, H_pad, Z, Z2_pad = prep["D"], prep["H_pad"], prep["Z"], prep["Z2_pad"]
    B = x.shape[0]
    assert x.shape[1] == D

    TB = _choose_batch_tile(B, batch_tile)
    B_pad = _round_up(B, TB)

    # Only the batch rows are padded (no D padding -> no 8x read amplification).
    x_p = x if B_pad == B else jnp.pad(x, ((0, B_pad - B), (0, 0)))

    grid = (B_pad // TB,)

    def resident(shape):
        # Whole-array block, constant index -> stays VMEM-resident across grid.
        # TODO(synk): try pipeline_mode=pl.Buffered(1) here to halve resident
        # weight VMEM on v7x once verified on the target jax/Mosaic version.
        return pl.BlockSpec(shape, lambda i, _s=shape: (0,) * len(_s))

    in_specs = [pl.BlockSpec((TB, D), lambda i: (i, 0)),
                resident(prep["flat"][0].shape),      # W_inp (D, H_pad)
                resident(prep["flat"][1].shape)]      # b_inp (1, H_pad)
    if n_hidden > 0:
        in_specs += [resident(prep["flat"][2].shape),  # W_hid stack
                     resident(prep["flat"][3].shape)]  # b_hid stack
    in_specs += [resident(prep["flat"][-2].shape),     # W_out fused
                 resident(prep["flat"][-1].shape)]     # b_out fused

    out = pl.pallas_call(
        functools.partial(_encoder_kernel, n_hidden),
        out_shape=jax.ShapeDtypeStruct((B_pad, Z2_pad), x.dtype),
        grid=grid,
        in_specs=in_specs,
        out_specs=pl.BlockSpec((TB, Z2_pad), lambda i: (i, 0)),
        compiler_params=pltpu.CompilerParams(
            dimension_semantics=("parallel",),          # 2 TCs on v7x
            vmem_limit_bytes=_vmem_limit_bytes(prep, TB, x.dtype.itemsize)),
    )(x_p, *prep["flat"])

    mu = out[:B, :Z]
    logvar = out[:B, Z:2 * Z]
    return mu, logvar


# --------------------------------------------------------------------------
# Init / reference (test scaffolding)
# --------------------------------------------------------------------------
def init_params(key, layers):
    """Deterministic init mimicking PyTorch Linear default U(-1/sqrt(fan_in), ..)."""
    def linear(key, fan_in, fan_out):
        kw, kb = jax.random.split(key)
        bound = 1.0 / jnp.sqrt(jnp.float32(fan_in))
        w = jax.random.uniform(kw, (fan_in, fan_out), jnp.float32, -bound, bound)
        b = jax.random.uniform(kb, (1, fan_out), jnp.float32, -bound, bound)
        return w, b

    n_hidden = len(layers[1:-1])
    keys = jax.random.split(key, 3 + n_hidden)
    params = {"inp": linear(keys[0], layers[0], layers[1]), "hidden": []}
    # Faithful to the PyTorch module: each hidden layer is Linear(h, h).
    for i, h in enumerate(layers[1:-1]):
        params["hidden"].append(linear(keys[1 + i], h, h))
    params["out1"] = linear(keys[-2], layers[-2], layers[-1])
    params["out2"] = linear(keys[-1], layers[-2], layers[-1])
    return params


def reference_forward(x, params):
    w, b = params["inp"]
    h = jnp.maximum(x @ w + b, 0.0)
    for w, b in params["hidden"]:
        h = jnp.maximum(h @ w + b, 0.0)
    w1, b1 = params["out1"]
    w2, b2 = params["out2"]
    return h @ w1 + b1, h @ w2 + b2


if __name__ == "__main__":
    # layers = [input_dim, hidden, hidden, latent]
    layers = [16, 32, 32, 8]

    key = jax.random.PRNGKey(0)
    k_p, k_x1, k_x2 = jax.random.split(key, 3)
    params = init_params(k_p, layers)

    # One-time weight preparation (f32 path).
    prep_f32 = prepare_params(params)

    # Small batch (single grid step).
    x1 = jax.random.normal(k_x1, (8, layers[0]), jnp.float32)
    mu, logvar = jax.block_until_ready(variational_encoder_fc(x1, prep_f32))
    mu_r, lv_r = reference_forward(x1, params)
    assert jnp.allclose(mu, mu_r, atol=1e-5, rtol=1e-5)
    assert jnp.allclose(logvar, lv_r, atol=1e-5, rtol=1e-5)

    # Larger, non-multiple batch exercises adaptive batch tiling (TB=64, grid=5).
    x2 = jax.random.normal(k_x2, (300, layers[0]), jnp.float32)
    mu2, lv2 = jax.block_until_ready(variational_encoder_fc(x2, prep_f32))
    mu2_r, lv2_r = reference_forward(x2, params)
    assert jnp.allclose(mu2, mu2_r, atol=1e-5, rtol=1e-5)
    assert jnp.allclose(lv2, lv2_r, atol=1e-5, rtol=1e-5)

    # bf16 weights: MXU-native path, f32 accumulation, looser tolerance.
    prep_bf16 = prepare_params(params, weight_dtype=jnp.bfloat16)
    mu3, lv3 = jax.block_until_ready(variational_encoder_fc(x2, prep_bf16))
    assert jnp.allclose(mu3, mu2_r, atol=5e-2, rtol=5e-2)
    assert jnp.allclose(lv3, lv2_r, atol=5e-2, rtol=5e-2)

    print("KERNEL_OK")
</pallas_src>

<mosaic_0001>
module attributes {stable_mosaic.version = 11 : i64} {
  func.func @_encoder_kernel(%arg0: i32, %arg1: memref<8x16xf32, #tpu.memory_space<vmem>>, %arg2: memref<16x128xf32, #tpu.memory_space<vmem>>, %arg3: memref<1x128xf32, #tpu.memory_space<vmem>>, %arg4: memref<2x128x128xf32, #tpu.memory_space<vmem>>, %arg5: memref<2x1x128xf32, #tpu.memory_space<vmem>>, %arg6: memref<128x128xf32, #tpu.memory_space<vmem>>, %arg7: memref<1x128xf32, #tpu.memory_space<vmem>>, %arg8: memref<8x128xf32, #tpu.memory_space<vmem>>) attributes {dimension_semantics = [#tpu.dimension_semantics<parallel>], iteration_bounds = array<i64: 1>, scalar_prefetch = 0 : i64, scratch_operands = 0 : i64, tpu.core_type = #tpu.core_type<tc>, window_params = [{transform_indices = @transform_0, window_bounds = array<i64: 8, 16>}, {pipeline_mode = #tpu.pipeline_mode<synchronous>, transform_indices = @transform_1, window_bounds = array<i64: 16, 128>}, {pipeline_mode = #tpu.pipeline_mode<synchronous>, transform_indices = @transform_2, window_bounds = array<i64: 1, 128>}, {pipeline_mode = #tpu.pipeline_mode<synchronous>, transform_indices = @transform_3, window_bounds = array<i64: 2, 128, 128>}, {pipeline_mode = #tpu.pipeline_mode<synchronous>, transform_indices = @transform_4, window_bounds = array<i64: 2, 1, 128>}, {pipeline_mode = #tpu.pipeline_mode<synchronous>, transform_indices = @transform_5, window_bounds = array<i64: 128, 128>}, {pipeline_mode = #tpu.pipeline_mode<synchronous>, transform_indices = @transform_6, window_bounds = array<i64: 1, 128>}, {transform_indices = @transform_7, window_bounds = array<i64: 8, 128>}]} {
    %c0 = arith.constant 0 : index
    %c0_0 = arith.constant 0 : index
    %0 = vector.load %arg1[%c0, %c0_0] : memref<8x16xf32, #tpu.memory_space<vmem>>, vector<8x16xf32>
    %c0_1 = arith.constant 0 : index
    %c0_2 = arith.constant 0 : index
    %1 = vector.load %arg2[%c0_1, %c0_2] : memref<16x128xf32, #tpu.memory_space<vmem>>, vector<16x128xf32>
    %cst = arith.constant dense<0.000000e+00> : vector<8x128xf32>
    %2 = tpu.matmul %0, %1, %cst {dimension_numbers = #tpu.dot_dimension_numbers<[1], [0], [0], [1], [0, 0, 1, 1], [], []>} : vector<8x16xf32>, vector<16x128xf32>, vector<8x128xf32> -> vector<8x128xf32>
    %c0_3 = arith.constant 0 : index
    %c0_4 = arith.constant 0 : index
    %3 = vector.load %arg3[%c0_3, %c0_4] : memref<1x128xf32, #tpu.memory_space<vmem>>, vector<1x128xf32>
    %4 = vector.broadcast %3 : vector<1x128xf32> to vector<8x128xf32>
    %5 = arith.addf %2, %4 : vector<8x128xf32>
    %cst_5 = arith.constant 0.000000e+00 : f32
    %6 = vector.broadcast %cst_5 : f32 to vector<8x128xf32>
    %7 = arith.maximumf %5, %6 : vector<8x128xf32>
    %c0_6 = arith.constant 0 : index
    %c0_7 = arith.constant 0 : index
    %c0_8 = arith.constant 0 : index
    %8 = vector.load %arg4[%c0_6, %c0_7, %c0_8] : memref<2x128x128xf32, #tpu.memory_space<vmem>>, vector<1x128x128xf32>
    %9 = vector.shape_cast %8 : vector<1x128x128xf32> to vector<128x128xf32>
    %cst_9 = arith.constant dense<0.000000e+00> : vector<8x128xf32>
    %10 = tpu.matmul %7, %9, %cst_9 {dimension_numbers = #tpu.dot_dimension_numbers<[1], [0], [0], [1], [0, 0, 1, 1], [], []>} : vector<8x128xf32>, vector<128x128xf32>, vector<8x128xf32> -> vector<8x128xf32>
    %c0_10 = arith.constant 0 : index
    %c0_11 = arith.constant 0 : index
    %c0_12 = arith.constant 0 : index
    %11 = vector.load %arg5[%c0_10, %c0_11, %c0_12] : memref<2x1x128xf32, #tpu.memory_space<vmem>>, vector<1x1x128xf32>
    %12 = vector.shape_cast %11 : vector<1x1x128xf32> to vector<1x128xf32>
    %13 = vector.broadcast %12 : vector<1x128xf32> to vector<8x128xf32>
    %14 = arith.addf %10, %13 : vector<8x128xf32>
    %cst_13 = arith.constant 0.000000e+00 : f32
    %15 = vector.broadcast %cst_13 : f32 to vector<8x128xf32>
    %16 = arith.maximumf %14, %15 : vector<8x128xf32>
    %c1 = arith.constant 1 : index
    %c0_14 = arith.constant 0 : index
    %c0_15 = arith.constant 0 : index
    %17 = vector.load %arg4[%c1, %c0_14, %c0_15] : memref<2x128x128xf32, #tpu.memory_space<vmem>>, vector<1x128x128xf32>
    %18 = vector.shape_cast %17 : vector<1x128x128xf32> to vector<128x128xf32>
    %cst_16 = arith.constant dense<0.000000e+00> : vector<8x128xf32>
    %19 = tpu.matmul %16, %18, %cst_16 {dimension_numbers = #tpu.dot_dimension_numbers<[1], [0], [0], [1], [0, 0, 1, 1], [], []>} : vector<8x128xf32>, vector<128x128xf32>, vector<8x128xf32> -> vector<8x128xf32>
    %c1_17 = arith.constant 1 : index
    %c0_18 = arith.constant 0 : index
    %c0_19 = arith.constant 0 : index
    %20 = vector.load %arg5[%c1_17, %c0_18, %c0_19] : memref<2x1x128xf32, #tpu.memory_space<vmem>>, vector<1x1x128xf32>
    %21 = vector.shape_cast %20 : vector<1x1x128xf32> to vector<1x128xf32>
    %22 = vector.broadcast %21 : vector<1x128xf32> to vector<8x128xf32>
    %23 = arith.addf %19, %22 : vector<8x128xf32>
    %cst_20 = arith.constant 0.000000e+00 : f32
    %24 = vector.broadcast %cst_20 : f32 to vector<8x128xf32>
    %25 = arith.maximumf %23, %24 : vector<8x128xf32>
    %c0_21 = arith.constant 0 : index
    %c0_22 = arith.constant 0 : index
    %26 = vector.load %arg6[%c0_21, %c0_22] : memref<128x128xf32, #tpu.memory_space<vmem>>, vector<128x128xf32>
    %cst_23 = arith.constant dense<0.000000e+00> : vector<8x128xf32>
    %27 = tpu.matmul %25, %26, %cst_23 {dimension_numbers = #tpu.dot_dimension_numbers<[1], [0], [0], [1], [0, 0, 1, 1], [], []>} : vector<8x128xf32>, vector<128x128xf32>, vector<8x128xf32> -> vector<8x128xf32>
    %c0_24 = arith.constant 0 : index
    %c0_25 = arith.constant 0 : index
    %28 = vector.load %arg7[%c0_24, %c0_25] : memref<1x128xf32, #tpu.memory_space<vmem>>, vector<1x128xf32>
    %29 = vector.broadcast %28 : vector<1x128xf32> to vector<8x128xf32>
    %30 = arith.addf %27, %29 : vector<8x128xf32>
    %c0_26 = arith.constant 0 : index
    %c0_27 = arith.constant 0 : index
    %31 = vector.load %arg8[%c0_26, %c0_27] : memref<8x128xf32, #tpu.memory_space<vmem>>, vector<8x128xf32>
    tpu.vector_store %arg8[%c0_26, %c0_27], %30 {strides = array<i32>} : memref<8x128xf32, #tpu.memory_space<vmem>>, vector<8x128xf32>,
    return
  }
  func.func @transform_0(%arg0: i32) -> (i32, i32) {
    %c0_i32 = arith.constant 0 : i32
    %c0_i32_0 = arith.constant 0 : i32
    return %arg0, %c0_i32 : i32, i32
  }
  func.func @transform_1(%arg0: i32) -> (i32, i32) {
    %c0_i32 = arith.constant 0 : i32
    %c0_i32_0 = arith.constant 0 : i32
    %c0_i32_1 = arith.constant 0 : i32
    return %c0_i32, %c0_i32_0 : i32, i32
  }
  func.func @transform_2(%arg0: i32) -> (i32, i32) {
    %c0_i32 = arith.constant 0 : i32
    %c0_i32_0 = arith.constant 0 : i32
    %c0_i32_1 = arith.constant 0 : i32
    return %c0_i32, %c0_i32_0 : i32, i32
  }
  func.func @transform_3(%arg0: i32) -> (i32, i32, i32) {
    %c0_i32 = arith.constant 0 : i32
    %c0_i32_0 = arith.constant 0 : i32
    %c0_i32_1 = arith.constant 0 : i32
    %c0_i32_2 = arith.constant 0 : i32
    return %c0_i32, %c0_i32_0, %c0_i32_1 : i32, i32, i32
  }
  func.func @transform_4(%arg0: i32) -> (i32, i32, i32) {
    %c0_i32 = arith.constant 0 : i32
    %c0_i32_0 = arith.constant 0 : i32
    %c0_i32_1 = arith.constant 0 : i32
    %c0_i32_2 = arith.constant 0 : i32
    return %c0_i32, %c0_i32_0, %c0_i32_1 : i32, i32, i32
  }
  func.func @transform_5(%arg0: i32) -> (i32, i32) {
    %c0_i32 = arith.constant 0 : i32
    %c0_i32_0 = arith.constant 0 : i32
    %c0_i32_1 = arith.constant 0 : i32
    return %c0_i32, %c0_i32_0 : i32, i32
  }
  func.func @transform_6(%arg0: i32) -> (i32, i32) {
    %c0_i32 = arith.constant 0 : i32
    %c0_i32_0 = arith.constant 0 : i32
    %c0_i32_1 = arith.constant 0 : i32
    return %c0_i32, %c0_i32_0 : i32, i32
  }
  func.func @transform_7(%arg0: i32) -> (i32, i32) {
    %c0_i32 = arith.constant 0 : i32
    %c0_i32_0 = arith.constant 0 : i32
    return %arg0, %c0_i32 : i32, i32
  }
}

</mosaic_0001>

<bundles_post_ra>
// kernel: tpu_custom_call.1
= control target key start
LH: loop header
LB: loop body
LE: loop exit
PB: predicated region body
PF: predicated region fallthrough
CT: control target
= control target key end

     0   :  { %12 = vsyncpa [#allocation3], 0  ;;  %s479_s0 = inlined_call_operand.hbm [shape: f32[8,16], index: 0, kind: input, shape index: {}]   ;;  %s480_s1 = inlined_call_operand.hbm [shape: f32[16,128], index: 1, kind: input, shape index: {}]   ;;  %s481_s2 = inlined_call_operand.vmem [shape: f32[1,128], index: 2, kind: input, shape index: {}]   ;;  %s482_s3 = inlined_call_operand.hbm [shape: f32[2,128,128], index: 3, kind: input, shape index: {}]   ;;  %s483_s4 = inlined_call_operand.vmem [shape: f32[2,1,128], index: 4, kind: input, shape index: {}]   ;;  %s484_s5 = inlined_call_operand.hbm [shape: f32[128,128], index: 5, kind: input, shape index: {}]   ;;  %s485_s6 = inlined_call_operand.vmem [shape: f32[1,128], index: 6, kind: input, shape index: {}]   ;;  %s486_s7 = inlined_call_operand.hbm [shape: f32[8,128], index: 7, kind: output, shape index: {}]  }
   0x1   :  { %13 = vsyncpa [#allocation6], 0 }
   0x2   :  { %14 = vsyncpa [#allocation9], 0  ;;  %s31_s26 = sshll.u32 %s480_s1, 4  ;;  %s32_s26 = int_to_ptr.hbm [resolvable:$true] %s31_s26 }
   0x3   :  { %15 = vsyncpa [#allocation4], 0  ;;  %s405_s27 = smov [#allocation5]   ;;  %s21_s8 = sshll.u32 %s479_s0, 4  ;;  %s22_s8 = int_to_ptr.hbm [resolvable:$true] %s21_s8 }
   0x4   :  { %s33_s28 = sshll.u32 %s405_s27, 4  ;;  %s406_s9 = smov 128   ;;  %s34_s28 = int_to_ptr.vmem [resolvable:$true] %s33_s28 }
   0x5   :  { %s407_s10 = smov 8   ;;  %s408_s11 = smov [#allocation2]  }
   0x6   :  { %39 = dma.hbm_to_vmem [thread:$0]  %s32_s26, 256, %s34_s28, [#allocation6], %s406_s9, %s406_s9, %s407_s10  }
   0x7   :  { %s23_s12 = sshll.u32 %s408_s11, 4  ;;  %s46_s15 = sshll.u32 %s482_s3, 4  ;;  %s24_s12 = int_to_ptr.vmem [resolvable:$true] %s23_s12  ;;  %s47_s15 = int_to_ptr.hbm [resolvable:$true] %s46_s15 }
   0x8   :  { %26 = dma.hbm_to_vmem [thread:$0]  %s22_s8, 128, %s24_s12, [#allocation3]  }
   0x9   :  { %s61_s17 = sshll.u32 %s484_s5, 4  ;;  %s409_s18 = smov [#allocation7]   ;;  %s62_s17 = int_to_ptr.hbm [resolvable:$true] %s61_s17 }
   0xa   :  { %s48_s19 = sshll.u32 %s409_s18, 4  ;;  %s410_s0 = smov [#allocation8]   ;;  %s49_s19 = int_to_ptr.vmem [resolvable:$true] %s48_s19 }
   0xb   :  { %54 = dma.hbm_to_vmem [thread:$0]  %s47_s15, 4096, %s49_s19, [#allocation6], %s406_s9, %s406_s9, %s407_s10  }
   0xc   :  { %s63_s20 = sshll.u32 %s410_s0, 4  ;;  %s64_s20 = int_to_ptr.vmem [resolvable:$true] %s63_s20 }
   0xd   :  { %69 = dma.hbm_to_vmem [thread:$0]  %s62_s17, 2048, %s64_s20, [#allocation9], %s406_s9, %s406_s9, %s407_s10  }
   0xe   :  { %397 = dma.done.wait [#allocation3], 128  }
   0xf   :  { %398 = vsyncadd [#allocation3], 4294967168 }
  0x10   :  { %399 = dma.done.wait [#allocation6], 4352  }
  0x11   :  { %400 = vsyncadd [#allocation6], 4294962944 }
  0x12   :  { %401 = dma.done.wait [#allocation9], 2048  }
  0x13   :  { %402 = vsyncadd [#allocation9], 4294965248  ;;  %v90_v0 = vld [vmem:[#allocation5 + $0x8] sm:$0xff]  ;;  %v89_v1 = vld [vmem:[#allocation5] sm:$0xff]  ;;  %vm95_vm0 = vcmask 130048   ;;  %s411_s26 = smov [#allocation10]  }
  0x14   :  { %113 = vmatpush.msra.mxu0 %v90_v0  ;;  %v88_v2 = vld [vmem:[#allocation2] sm:$0xff]  ;;  %v135_v3 = vld [vmem:[#allocation7 + $0x78] sm:$0xff]  ;;  %v134_v4 = vld [vmem:[#allocation7 + $0x70] sm:$0xff]  ;;  %s250_s27 = sshll.u32 %s411_s26, 4  ;;  %s252_s30 = sshll.u32 %s486_s7, 4  ;;  %s251_s27 = int_to_ptr.vmem [resolvable:$true] %s250_s27  ;;  %s253_s30 = int_to_ptr.hbm [resolvable:$true] %s252_s30 }
  0x15   :  { %140 = vmatpush.msra.mxu1 %v135_v3  ;;  %v133_v5 = vld [vmem:[#allocation7 + $0x68] sm:$0xff]  ;;  %v132_v6 = vld [vmem:[#allocation7 + $0x60] sm:$0xff]  ;;  %v131_v7 = vld [vmem:[#allocation7 + $0x58] sm:$0xff] }
  0x16   :  { %114 = vmatpush.msra.mxu0 %v89_v1  ;;  %v130_v8 = vld [vmem:[#allocation7 + $0x50] sm:$0xff]  ;;  %v129_v9 = vld [vmem:[#allocation7 + $0x48] sm:$0xff]  ;;  %v128_v10 = vld [vmem:[#allocation7 + $0x40] sm:$0xff] }
  0x17   :  { %264 = vmatmul.msk.f32.vlgmr.msra.gmra.mxu0 %vm95_vm0, %v88_v2  ;;  %141 = vmatpush.msra.mxu1 %v134_v4  ;;  %v127_v11 = vld [vmem:[#allocation7 + $0x38] sm:$0xff]  ;;  %v126_v12 = vld [vmem:[#allocation7 + $0x30] sm:$0xff]  ;;  %v125_v13 = vld [vmem:[#allocation7 + $0x28] sm:$0xff] }
  0x18   :  { %v124_v14 = vld [vmem:[#allocation7 + $0x20] sm:$0xff]  ;;  %v123_v15 = vld [vmem:[#allocation7 + $0x18] sm:$0xff]  ;;  %v122_v16 = vld [vmem:[#allocation7 + $0x10] sm:$0xff] }
  0x19   :  { %142 = vmatpush.msra.mxu1 %v133_v5  ;;  %v121_v17 = vld [vmem:[#allocation7 + $0x8] sm:$0xff]  ;;  %v120_v18 = vld [vmem:[#allocation7] sm:$0xff]  ;;  %v177_v19 = vld [vmem:[#allocation7 + $0xf8] sm:$0xff] }
  0x1a   :  { %v176_v20 = vld [vmem:[#allocation7 + $0xf0] sm:$0xff]  ;;  %183 = vmatpush.msra.mxu2 %v177_v19  ;;  %v175_v21 = vld [vmem:[#allocation7 + $0xe8] sm:$0xff]  ;;  %v174_v22 = vld [vmem:[#allocation7 + $0xe0] sm:$0xff] }
  0x1b   :  { %143 = vmatpush.msra.mxu1 %v132_v6  ;;  %v173_v23 = vld [vmem:[#allocation7 + $0xd8] sm:$0xff]  ;;  %v172_v24 = vld [vmem:[#allocation7 + $0xd0] sm:$0xff]  ;;  %v171_v25 = vld [vmem:[#allocation7 + $0xc8] sm:$0xff] }
  0x1c   :  { %184 = vmatpush.msra.mxu2 %v176_v20  ;;  %v170_v26 = vld [vmem:[#allocation7 + $0xc0] sm:$0xff]  ;;  %v169_v27 = vld [vmem:[#allocation7 + $0xb8] sm:$0xff]  ;;  %v168_v28 = vld [vmem:[#allocation7 + $0xb0] sm:$0xff] }
  0x1d   :  { %144 = vmatpush.msra.mxu1 %v131_v7  ;;  %v167_v29 = vld [vmem:[#allocation7 + $0xa8] sm:$0xff]  ;;  %v166_v30 = vld [vmem:[#allocation7 + $0xa0] sm:$0xff]  ;;  %v165_v31 = vld [vmem:[#allocation7 + $0x98] sm:$0xff] }
  0x1e   :  { %185 = vmatpush.msra.mxu2 %v175_v21  ;;  %v273_v32 = vld [vmem:[%s481_s2] ss:$0 sm:$0xff]  ;;  %v164_v36 = vld [vmem:[#allocation7 + $0x90] sm:$0xff]  ;;  %v162_v38 = vld [vmem:[#allocation7 + $0x80] sm:$0xff] }
  0x1f   :  { %145 = vmatpush.msra.mxu1 %v130_v8  ;;  %v163_v37 = vld [vmem:[#allocation7 + $0x88] sm:$0xff]  ;;  %v219_v39 = vld [vmem:[#allocation8 + $0x78] sm:$0xff]  ;;  %v218_v40 = vld [vmem:[#allocation8 + $0x70] sm:$0xff] }
  0x20   :  { %186 = vmatpush.msra.mxu2 %v174_v22  ;;  %224 = vmatpush.msra.mxu3 %v219_v39  ;;  %v217_v41 = vld [vmem:[#allocation8 + $0x68] sm:$0xff]  ;;  %v216_v42 = vld [vmem:[#allocation8 + $0x60] sm:$0xff]  ;;  %v215_v43 = vld [vmem:[#allocation8 + $0x58] sm:$0xff] }
  0x21   :  { %146 = vmatpush.msra.mxu1 %v129_v9  ;;  %v214_v44 = vld [vmem:[#allocation8 + $0x50] sm:$0xff]  ;;  %v213_v45 = vld [vmem:[#allocation8 + $0x48] sm:$0xff]  ;;  %v212_v46 = vld [vmem:[#allocation8 + $0x40] sm:$0xff] }
  0x22   :  { %187 = vmatpush.msra.mxu2 %v173_v23  ;;  %225 = vmatpush.msra.mxu3 %v218_v40  ;;  %v211_v47 = vld [vmem:[#allocation8 + $0x38] sm:$0xff]  ;;  %v210_v48 = vld [vmem:[#allocation8 + $0x30] sm:$0xff]  ;;  %v209_v49 = vld [vmem:[#allocation8 + $0x28] sm:$0xff] }
  0x23   :  { %147 = vmatpush.msra.mxu1 %v128_v10  ;;  %v208_v50 = vld [vmem:[#allocation8 + $0x20] sm:$0xff]  ;;  %v207_v51 = vld [vmem:[#allocation8 + $0x18] sm:$0xff]  ;;  %v274_v52 = vld [vmem:[%s483_s4] ss:$0 sm:$0xff] }
  0x24   :  { %188 = vmatpush.msra.mxu2 %v172_v24  ;;  %226 = vmatpush.msra.mxu3 %v217_v41  ;;  %v206_v56 = vld [vmem:[#allocation8 + $0x10] sm:$0xff]  ;;  %v205_v57 = vld [vmem:[#allocation8 + $0x8] sm:$0xff]  ;;  %v204_v58 = vld [vmem:[#allocation8] sm:$0xff] }
  0x25   :  { %148 = vmatpush.msra.mxu1 %v127_v11  ;;  %v275_v59 = vld [vmem:[%s483_s4 + $0x1] ss:$0 sm:$0xff]  ;;  %v276_v63 = vld [vmem:[%s485_s6] ss:$0 sm:$0xff] }
  0x26   :  { %189 = vmatpush.msra.mxu2 %v171_v25  ;;  %227 = vmatpush.msra.mxu3 %v216_v42 }
  0x27   :  { %149 = vmatpush.msra.mxu1 %v126_v12 }
  0x28   :  { %190 = vmatpush.msra.mxu2 %v170_v26  ;;  %228 = vmatpush.msra.mxu3 %v215_v43 }
  0x29   :  { %150 = vmatpush.msra.mxu1 %v125_v13 }
  0x2a   :  { %191 = vmatpush.msra.mxu2 %v169_v27  ;;  %229 = vmatpush.msra.mxu3 %v214_v44 }
  0x2b   :  { %151 = vmatpush.msra.mxu1 %v124_v14 }
  0x2c   :  { %192 = vmatpush.msra.mxu2 %v168_v28  ;;  %230 = vmatpush.msra.mxu3 %v213_v45 }
  0x2d   :  { %152 = vmatpush.msra.mxu1 %v123_v15 }
  0x2e   :  { %193 = vmatpush.msra.mxu2 %v167_v29  ;;  %231 = vmatpush.msra.mxu3 %v212_v46 }
  0x2f   :  { %153 = vmatpush.msra.mxu1 %v122_v16 }
  0x30   :  { %194 = vmatpush.msra.mxu2 %v166_v30  ;;  %232 = vmatpush.msra.mxu3 %v211_v47 }
  0x31   :  { %154 = vmatpush.msra.mxu1 %v121_v17 }
  0x32   :  { %195 = vmatpush.msra.mxu2 %v165_v31  ;;  %233 = vmatpush.msra.mxu3 %v210_v48 }
  0x33   :  { %155 = vmatpush.msra.mxu1 %v120_v18 }
  0x34   :  { %196 = vmatpush.msra.mxu2 %v164_v36  ;;  %234 = vmatpush.msra.mxu3 %v209_v49 }
  0x36   :  { %197 = vmatpush.msra.mxu2 %v163_v37  ;;  %235 = vmatpush.msra.mxu3 %v208_v50 }
  0x38   :  { %198 = vmatpush.msra.mxu2 %v162_v38  ;;  %236 = vmatpush.msra.mxu3 %v207_v51 }
  0x3a   :  { %237 = vmatpush.msra.mxu3 %v206_v56 }
  0x3c   :  { %238 = vmatpush.msra.mxu3 %v205_v57 }
  0x3e   :  { %239 = vmatpush.msra.mxu3 %v204_v58 }
  0x94   :  { %v116_v33 = vpop.f32.mrf.mxu0 }
  0x95   :  { %v117_v34 = vadd.f32 %v273_v32, %v116_v33 }
  0x97   :  { %v119_v35 = vmax.f32 %v117_v34, 0.0 }
  0x99   :  { %156 = vmatmul.f32.vlgmr.msra.gmra.mxu1 %v119_v35 }
 0x116   :  { %v157_v53 = vpop.f32.mrf.mxu1 }
 0x117   :  { %v158_v54 = vadd.f32 %v274_v52, %v157_v53 }
 0x119   :  { %v160_v55 = vmax.f32 %v158_v54, 0.0 }
 0x11b   :  { %199 = vmatmul.f32.vlgmr.msra.gmra.mxu2 %v160_v55 }
 0x19e   :  { %v200_v60 = vpop.f32.mrf.mxu2 }
 0x19f   :  { %v201_v61 = vadd.f32 %v275_v59, %v200_v60 }
 0x1a1   :  { %v203_v62 = vmax.f32 %v201_v61, 0.0 }
 0x1a3   :  { %240 = vmatmul.f32.vlgmr.msra.gmra.mxu3 %v203_v62 }
 0x226   :  { %v241_v0 = vpop.f32.mrf.mxu3 }
 0x227   :  { %v242_v1 = vadd.f32 %v276_v63, %v241_v0 }
 0x229   :  { %244 = vst [vmem:[#allocation10] sm:$0xff] %v242_v1 }
 0x22a   :  { %255 = dma.vmem_to_hbm [thread:$0]  %s251_s27, 128, %s253_s30, [#allocation4]  }
 0x22b   :  { %403 = dma.done.wait [#allocation4], 128  }
 0x22c   :  { %404 = vsyncadd [#allocation4], 4294967168 }
 0x22d   :  { %260 = vsyncpa [#allocation3], 1 }
 0x22e   :  { %261 = vsyncpa [#allocation6], 1 }
 0x22f   :  { %262 = vsyncpa [#allocation9], 1 }
 0x230   :  { %263 = vsyncpa [#allocation4], 1 }

</bundles_post_ra>
